<compile_context>
chip_gen: v6e
topology: v6e:2x2x1
jax: 0.10.0
libtpu: 0.0.40
codegen_flags: <defaults>
</compile_context>

<pallas_src>
import math
import functools

import jax
import jax.numpy as jnp
from jax.experimental import pallas as pl
from jax.experimental.pallas import tpu as pltpu


def _round_up(n, m):
    return ((n + m - 1) // m) * m


def _mlp_kernel(num_hidden, x_ref, *refs):
    """refs = (w1, b1, ..., wH, bH, wv, bv, out_ref).

    Weights arrive pre-transposed as (in, out); biases as (1, out).
    """
    param_refs = refs[:-1]
    out_ref = refs[-1]

    h = x_ref[...]                              # (TB, input_size) f32
    # Hidden layers: linear + ReLU (contract on stored layout, f32 accumulate)
    for i in range(num_hidden):
        w = param_refs[2 * i][...]              # (in_i, out_i)
        b = param_refs[2 * i + 1][...]          # (1, out_i)
        h = jnp.dot(h, w, preferred_element_type=jnp.float32) + b
        h = jnp.maximum(h, 0.0)                 # nonlinearity = relu
    # Value head: linear, no nonlinearity
    wv = param_refs[-2][...]                    # (in_last, output_size)
    bv = param_refs[-1][...]                    # (1, output_size)
    out_ref[...] = (jnp.dot(h, wv, preferred_element_type=jnp.float32)
                    + bv).astype(out_ref.dtype)


def state_value_critic_forward(x, params, *, block_batch=512):
    """x: (batch, input_size); params: flat list [w1,b1,...,wv,bv] with
    PyTorch layout (out, in) weights and (1, out) biases."""
    x = jnp.asarray(x, jnp.float32)
    batch, input_size = x.shape
    num_hidden = (len(params) - 2) // 2
    output_size = params[-2].shape[0]

    # One-time layout change OUTSIDE the kernel: (out, in) -> (in, out).
    kernel_params = []
    for i in range(len(params) // 2):
        kernel_params.append(jnp.asarray(params[2 * i], jnp.float32).T)
        kernel_params.append(
            jnp.asarray(params[2 * i + 1], jnp.float32).reshape(1, -1))

    # Batch tiling: fill the MXU M dimension; pad batch to a tile multiple.
    tb = min(block_batch, _round_up(batch, 8))
    tb = _round_up(tb, 8)
    padded = _round_up(batch, tb)
    if padded != batch:
        x = jnp.pad(x, ((0, padded - batch), (0, 0)))
    num_tiles = padded // tb

    # Parameters: full-array blocks, same block every grid step -> resident
    # in VMEM across the whole grid (no re-DMA).
    param_specs = [pl.BlockSpec(p.shape, lambda i: (0, 0))
                   for p in kernel_params]

    # Cost estimate (helps XLA overlap this small kernel with other ops).
    widths = ([input_size]
              + [params[2 * i].shape[0] for i in range(num_hidden)]
              + [output_size])
    flops = sum(2 * padded * a * b for a, b in zip(widths[:-1], widths[1:]))
    bytes_accessed = 4 * (padded * input_size
                          + sum(p.size for p in kernel_params)
                          + padded * output_size)
    cost = pl.CostEstimate(flops=flops, transcendentals=0,
                           bytes_accessed=bytes_accessed)

    # VMEM budget: double-buffered x/out tiles + resident params + activation
    # headroom; keep within the v7x 64 MiB physical / 32 MiB default scoped.
    vmem_needed = (2 * 4 * tb * input_size
                   + 2 * 4 * tb * output_size
                   + 4 * sum(p.size for p in kernel_params)
                   + 8 * 4 * tb * max(widths))
    vmem_limit = int(min(max(4 * vmem_needed, 16 * 1024 * 1024),
                         32 * 1024 * 1024))

    kernel = functools.partial(_mlp_kernel, num_hidden)

    out = pl.pallas_call(
        kernel,
        out_shape=jax.ShapeDtypeStruct((padded, output_size), jnp.float32),
        grid_spec=pltpu.PrefetchScalarGridSpec(
            num_scalar_prefetch=0,
            grid=(num_tiles,),
            in_specs=([pl.BlockSpec((tb, input_size), lambda i: (i, 0))]
                      + param_specs),
            out_specs=pl.BlockSpec((tb, output_size), lambda i: (i, 0)),
        ),
        compiler_params=pltpu.CompilerParams(
            dimension_semantics=("parallel",),
            vmem_limit_bytes=vmem_limit),
        cost_estimate=cost,
    )(x, *kernel_params)

    return out[:batch]


def init_params(key, input_size, hidden_sizes, output_size):
    """Deterministic init matching weight_init: xavier_uniform(gain=sqrt(2)),
    zero bias, applied to every nn.Linear (hidden layers and value head).
    Weights kept in PyTorch layout (out, in); biases as (1, out)."""
    layer_sizes = (input_size,) + tuple(hidden_sizes) + (output_size,)
    params = []
    gain = math.sqrt(2.0)
    for i in range(len(layer_sizes) - 1):
        fan_in, fan_out = layer_sizes[i], layer_sizes[i + 1]
        bound = gain * math.sqrt(6.0 / (fan_in + fan_out))
        key, sub = jax.random.split(key)
        w = jax.random.uniform(sub, (fan_out, fan_in), jnp.float32,
                               minval=-bound, maxval=bound)
        b = jnp.zeros((1, fan_out), jnp.float32)
        params.append(w)
        params.append(b)
    return params


def reference_forward(x, params):
    """Pure-JAX reference mirroring the PyTorch forward (F.linear layout)."""
    num_hidden = (len(params) - 2) // 2
    h = jnp.asarray(x, jnp.float32)
    for i in range(num_hidden):
        h = jnp.maximum(h @ params[2 * i].T + params[2 * i + 1], 0.0)
    return h @ params[-2].T + params[-1]


if __name__ == "__main__":
    # Small shapes consistent with the module: input_size=32, two hidden
    # layers of 32, output_size=1, batch=8.
    batch, input_size, hidden_sizes, output_size = 8, 32, (32, 32), 1

    key = jax.random.PRNGKey(0)
    key, kx = jax.random.split(key)
    x = jax.random.normal(kx, (batch, input_size), jnp.float32)
    params = init_params(key, input_size, hidden_sizes, output_size)

    v = jax.block_until_ready(state_value_critic_forward(x, params))
    v_ref = reference_forward(x, params)
    assert v.shape == (batch, output_size)
    assert jnp.allclose(v, v_ref, atol=1e-5, rtol=1e-5)

    # Exercise the gridded / padded path (non-divisible batch, multiple tiles).
    key, kx2 = jax.random.split(key)
    x2 = jax.random.normal(kx2, (300, input_size), jnp.float32)
    v2 = jax.block_until_ready(
        state_value_critic_forward(x2, params, block_batch=128))
    v2_ref = reference_forward(x2, params)
    assert v2.shape == (300, output_size)
    assert jnp.allclose(v2, v2_ref, atol=1e-4, rtol=1e-4)

    print("KERNEL_OK")
</pallas_src>

<mosaic_0001>
module attributes {stable_mosaic.version = 11 : i64} {
  func.func @_mlp_kernel(%arg0: i32, %arg1: memref<8x32xf32, #tpu.memory_space<vmem>>, %arg2: memref<32x32xf32, #tpu.memory_space<vmem>>, %arg3: memref<1x32xf32, #tpu.memory_space<vmem>>, %arg4: memref<32x32xf32, #tpu.memory_space<vmem>>, %arg5: memref<1x32xf32, #tpu.memory_space<vmem>>, %arg6: memref<32x1xf32, #tpu.memory_space<vmem>>, %arg7: memref<1x1xf32, #tpu.memory_space<vmem>>, %arg8: memref<8x1xf32, #tpu.memory_space<vmem>>) attributes {dimension_semantics = [#tpu.dimension_semantics<parallel>], iteration_bounds = array<i64: 1>, scalar_prefetch = 0 : i64, scratch_operands = 0 : i64, tpu.core_type = #tpu.core_type<tc>, window_params = [{transform_indices = @transform_0, window_bounds = array<i64: 8, 32>}, {pipeline_mode = #tpu.pipeline_mode<synchronous>, transform_indices = @transform_1, window_bounds = array<i64: 32, 32>}, {pipeline_mode = #tpu.pipeline_mode<synchronous>, transform_indices = @transform_2, window_bounds = array<i64: 1, 32>}, {pipeline_mode = #tpu.pipeline_mode<synchronous>, transform_indices = @transform_3, window_bounds = array<i64: 32, 32>}, {pipeline_mode = #tpu.pipeline_mode<synchronous>, transform_indices = @transform_4, window_bounds = array<i64: 1, 32>}, {pipeline_mode = #tpu.pipeline_mode<synchronous>, transform_indices = @transform_5, window_bounds = array<i64: 32, 1>}, {pipeline_mode = #tpu.pipeline_mode<synchronous>, transform_indices = @transform_6, window_bounds = array<i64: 1, 1>}, {transform_indices = @transform_7, window_bounds = array<i64: 8, 1>}]} {
    %c0 = arith.constant 0 : index
    %c0_0 = arith.constant 0 : index
    %0 = vector.load %arg1[%c0, %c0_0] : memref<8x32xf32, #tpu.memory_space<vmem>>, vector<8x32xf32>
    %c0_1 = arith.constant 0 : index
    %c0_2 = arith.constant 0 : index
    %1 = vector.load %arg2[%c0_1, %c0_2] : memref<32x32xf32, #tpu.memory_space<vmem>>, vector<32x32xf32>
    %c0_3 = arith.constant 0 : index
    %c0_4 = arith.constant 0 : index
    %2 = vector.load %arg3[%c0_3, %c0_4] : memref<1x32xf32, #tpu.memory_space<vmem>>, vector<1x32xf32>
    %cst = arith.constant dense<0.000000e+00> : vector<8x32xf32>
    %3 = tpu.matmul %0, %1, %cst {dimension_numbers = #tpu.dot_dimension_numbers<[1], [0], [0], [1], [0, 0, 1, 1], [], []>} : vector<8x32xf32>, vector<32x32xf32>, vector<8x32xf32> -> vector<8x32xf32>
    %4 = vector.broadcast %2 : vector<1x32xf32> to vector<8x32xf32>
    %5 = arith.addf %3, %4 : vector<8x32xf32>
    %cst_5 = arith.constant 0.000000e+00 : f32
    %6 = vector.broadcast %cst_5 : f32 to vector<8x32xf32>
    %7 = arith.maximumf %5, %6 : vector<8x32xf32>
    %c0_6 = arith.constant 0 : index
    %c0_7 = arith.constant 0 : index
    %8 = vector.load %arg4[%c0_6, %c0_7] : memref<32x32xf32, #tpu.memory_space<vmem>>, vector<32x32xf32>
    %c0_8 = arith.constant 0 : index
    %c0_9 = arith.constant 0 : index
    %9 = vector.load %arg5[%c0_8, %c0_9] : memref<1x32xf32, #tpu.memory_space<vmem>>, vector<1x32xf32>
    %cst_10 = arith.constant dense<0.000000e+00> : vector<8x32xf32>
    %10 = tpu.matmul %7, %8, %cst_10 {dimension_numbers = #tpu.dot_dimension_numbers<[1], [0], [0], [1], [0, 0, 1, 1], [], []>} : vector<8x32xf32>, vector<32x32xf32>, vector<8x32xf32> -> vector<8x32xf32>
    %11 = vector.broadcast %9 : vector<1x32xf32> to vector<8x32xf32>
    %12 = arith.addf %10, %11 : vector<8x32xf32>
    %cst_11 = arith.constant 0.000000e+00 : f32
    %13 = vector.broadcast %cst_11 : f32 to vector<8x32xf32>
    %14 = arith.maximumf %12, %13 : vector<8x32xf32>
    %c0_12 = arith.constant 0 : index
    %c0_13 = arith.constant 0 : index
    %15 = vector.load %arg6[%c0_12, %c0_13] : memref<32x1xf32, #tpu.memory_space<vmem>>, vector<32x1xf32>
    %c0_14 = arith.constant 0 : index
    %c0_15 = arith.constant 0 : index
    %16 = vector.load %arg7[%c0_14, %c0_15] : memref<1x1xf32, #tpu.memory_space<vmem>>, vector<1x1xf32>
    %cst_16 = arith.constant dense<0.000000e+00> : vector<8x1xf32>
    %17 = tpu.matmul %14, %15, %cst_16 {dimension_numbers = #tpu.dot_dimension_numbers<[1], [0], [0], [1], [0, 0, 1, 1], [], []>} : vector<8x32xf32>, vector<32x1xf32>, vector<8x1xf32> -> vector<8x1xf32>
    %18 = vector.broadcast %16 : vector<1x1xf32> to vector<8x1xf32>
    %19 = arith.addf %17, %18 : vector<8x1xf32>
    %c0_17 = arith.constant 0 : index
    %c0_18 = arith.constant 0 : index
    %20 = vector.load %arg8[%c0_17, %c0_18] : memref<8x1xf32, #tpu.memory_space<vmem>>, vector<8x1xf32>
    tpu.vector_store %arg8[%c0_17, %c0_18], %19 {strides = array<i32>} : memref<8x1xf32, #tpu.memory_space<vmem>>, vector<8x1xf32>,
    return
  }
  func.func @transform_0(%arg0: i32) -> (i32, i32) {
    %c0_i32 = arith.constant 0 : i32
    %c0_i32_0 = arith.constant 0 : i32
    return %arg0, %c0_i32 : i32, i32
  }
  func.func @transform_1(%arg0: i32) -> (i32, i32) {
    %c0_i32 = arith.constant 0 : i32
    %c0_i32_0 = arith.constant 0 : i32
    %c0_i32_1 = arith.constant 0 : i32
    return %c0_i32, %c0_i32_0 : i32, i32
  }
  func.func @transform_2(%arg0: i32) -> (i32, i32) {
    %c0_i32 = arith.constant 0 : i32
    %c0_i32_0 = arith.constant 0 : i32
    %c0_i32_1 = arith.constant 0 : i32
    return %c0_i32, %c0_i32_0 : i32, i32
  }
  func.func @transform_3(%arg0: i32) -> (i32, i32) {
    %c0_i32 = arith.constant 0 : i32
    %c0_i32_0 = arith.constant 0 : i32
    %c0_i32_1 = arith.constant 0 : i32
    return %c0_i32, %c0_i32_0 : i32, i32
  }
  func.func @transform_4(%arg0: i32) -> (i32, i32) {
    %c0_i32 = arith.constant 0 : i32
    %c0_i32_0 = arith.constant 0 : i32
    %c0_i32_1 = arith.constant 0 : i32
    return %c0_i32, %c0_i32_0 : i32, i32
  }
  func.func @transform_5(%arg0: i32) -> (i32, i32) {
    %c0_i32 = arith.constant 0 : i32
    %c0_i32_0 = arith.constant 0 : i32
    %c0_i32_1 = arith.constant 0 : i32
    return %c0_i32, %c0_i32_0 : i32, i32
  }
  func.func @transform_6(%arg0: i32) -> (i32, i32) {
    %c0_i32 = arith.constant 0 : i32
    %c0_i32_0 = arith.constant 0 : i32
    %c0_i32_1 = arith.constant 0 : i32
    return %c0_i32, %c0_i32_0 : i32, i32
  }
  func.func @transform_7(%arg0: i32) -> (i32, i32) {
    %c0_i32 = arith.constant 0 : i32
    %c0_i32_0 = arith.constant 0 : i32
    return %arg0, %c0_i32 : i32, i32
  }
}

</mosaic_0001>

<bundles_post_ra>
// kernel: tpu_custom_call.1
= control target key start
LH: loop header
LB: loop body
LE: loop exit
PB: predicated region body
PF: predicated region fallthrough
CT: control target
= control target key end

     0   :  { %s516_s0 = inlined_call_operand.hbm [shape: f32[8,32], index: 0, kind: input, shape index: {}]   ;;  %s517_s1 = inlined_call_operand.vmem [shape: f32[32,32], index: 1, kind: input, shape index: {}]   ;;  %s518_s2 = inlined_call_operand.vmem [shape: f32[1,32], index: 2, kind: input, shape index: {}]   ;;  %s519_s3 = inlined_call_operand.hbm [shape: f32[32,32], index: 3, kind: input, shape index: {}]   ;;  %s520_s4 = inlined_call_operand.vmem [shape: f32[1,32], index: 4, kind: input, shape index: {}]   ;;  %s521_s5 = inlined_call_operand.vmem [shape: f32[32,1], index: 5, kind: input, shape index: {}]   ;;  %s522_s6 = inlined_call_operand.<no memory space> [shape: f32[1,1], index: 6, kind: input, shape index: {}]   ;;  %s523_s7 = inlined_call_operand.vmem [shape: f32[8,1], index: 7, kind: output, shape index: {}]  }
   0x1   :  { %v12_v0 = vstv %s522_s6 }
   0x2   :  { %13 = vst [vmem:[#allocation2] sm:$0x1] %v12_v0 }
   0x3   :  { %14 = vsyncpa [#allocation4], 0 }
   0x4   :  { %15 = vsyncpa [#allocation6], 0  ;;  %s422_s26 = smov [#allocation3]   ;;  %s423_s28 = smov [#allocation5]  }
   0x5   :  { %s22_s27 = sshll.u32 %s422_s26, 4  ;;  %s35_s29 = sshll.u32 %s423_s28, 4  ;;  %s23_s27 = int_to_ptr.vmem [resolvable:$true] %s22_s27  ;;  %s36_s29 = int_to_ptr.vmem [resolvable:$true] %s35_s29 }
   0x6   :  { %s386_s30 = scalar_lea.vmem %s23_s27, 128  ;;  %p391_p1 = scmp.lt.s32.totalorder %s23_s27, %s23_s27 }
   0x7   :  { %p387_p0 = scmp.ne.s32.totalorder %s23_s27, %s386_s30  ;;  %p392_p2 = scmp.lt.s32.totalorder %s386_s30, %s386_s30 }
   0x9   :  { %p393_p3 = por %p392_p2, %p391_p1 }
   0xb   :  { %p394_p4 = pnand %p393_p3, %p387_p0 }
   0xd   :  { %397 = shalt.err (!%p394_p4)
}
   0xe   :  { %25 = dma.hbm_to_vmem [thread:$0]  %s516_s0, 128, %s23_s27, [#allocation4]  }
   0xf   :  { %s406_s6 = scalar_lea.vmem %s36_s29, 512  ;;  %p411_p6 = scmp.lt.s32.totalorder %s36_s29, %s36_s29 }
  0x10   :  { %p407_p5 = scmp.ne.s32.totalorder %s36_s29, %s406_s6  ;;  %p412_p7 = scmp.lt.s32.totalorder %s406_s6, %s406_s6 }
  0x12   :  { %p413_p8 = por %p412_p7, %p411_p6 }
  0x14   :  { %p414_p9 = pnand %p413_p8, %p407_p5 }
  0x16   :  { %417 = shalt.err (!%p414_p9)
}
  0x17   :  { %s424_s10 = smov 128   ;;  %s425_s11 = smov 8  }
  0x18   :  { %41 = dma.hbm_to_vmem [thread:$0]  %s519_s3, 512, %s36_s29, [#allocation6], %s424_s10, %s424_s10, %s425_s11  }
  0x19   :  { %418 = dma.done.wait [#allocation4], 128  }
  0x1a   :  { %419 = vsyncadd [#allocation4], 4294967168 }
  0x1b   :  { %420 = dma.done.wait [#allocation6], 512  }
  0x1c   :  { %421 = vsyncadd [#allocation6], 4294966784  ;;  %v426_v1 = vmov 0.0   ;;  %vm427_vm0 = vmmov 0   ;;  %v58_v2 = vld [vmem:[%s517_s1 + $0x18] sm:$0xff]  ;;  %v57_v3 = vld [vmem:[%s517_s1 + $0x10] sm:$0xff] }
  0x1d   :  { %339 = vmatprep.subr.mxu0 %v426_v1  ;;  %347 = vmatprep.mubr.msk.f32.mxu0 %vm427_vm0, %v426_v1  ;;  %v144_v4 = vld [vmem:[#allocation5 + $0x18] sm:$0xff]  ;;  %vm66_vm1 = vcmask 261120   ;;  %v143_v8 = vld [vmem:[#allocation5 + $0x10] sm:$0xff]  ;;  %v142_v9 = vld [vmem:[#allocation5 + $0x8] sm:$0xff]  ;;  %vm310_vm2 = vcmask 7168  }
  0x1e   :  { %350 = vmatprep.subr.mxu1 %v426_v1  ;;  %358 = vmatprep.mubr.msk.f32.mxu1 %vm427_vm0, %v426_v1  ;;  %v56_v5 = vld [vmem:[%s517_s1 + $0x8] sm:$0xff]  ;;  %v55_v6 = vld [vmem:[%s517_s1] sm:$0xff]  ;;  %v229_v11 = vld [vmem:[%s521_s5 + $0x18] sm:$0xff] }
  0x1f   :  { %340 = vmatpush3.msra.mxu0 %v58_v2  ;;  %351 = vmatpush3.msra.mxu1 %v144_v4  ;;  %v54_v7 = vld [vmem:[#allocation3] sm:$0xff]  ;;  %v141_v10 = vld [vmem:[#allocation5] sm:$0xff]  ;;  %v318_v12 = vld [vmem:[%s518_s2] ss:$0 sm:$0xff] }
  0x20   :  { %341 = vmatprep.subr.mxu0 %v426_v1  ;;  %352 = vmatprep.subr.mxu1 %v426_v1  ;;  %v228_v17 = vld [vmem:[%s521_s5 + $0x10] sm:$0xff]  ;;  %v227_v18 = vld [vmem:[%s521_s5 + $0x8] sm:$0xff]  ;;  %v226_v19 = vld [vmem:[%s521_s5] sm:$0xff] }
  0x21   :  { %342 = vmatpush3.msra.mxu0 %v57_v3  ;;  %353 = vmatpush3.msra.mxu1 %v143_v8  ;;  %v320_v20 = vld [vmem:[%s520_s4] ss:$0 sm:$0xff] }
  0x22   :  { %343 = vmatprep.subr.mxu0 %v426_v1  ;;  %354 = vmatprep.subr.mxu1 %v426_v1  ;;  %v322_v25 = vld [vmem:[#allocation2] ss:$0 sm:$0xff] }
  0x23   :  { %344 = vmatpush3.msra.mxu0 %v56_v5  ;;  %355 = vmatpush3.msra.mxu1 %v142_v9 }
  0x24   :  { %345 = vmatprep.subr.mxu0 %v426_v1  ;;  %356 = vmatprep.subr.mxu1 %v426_v1 }
  0x25   :  { %346 = vmatpush3.msra.mxu0 %v55_v6  ;;  %357 = vmatpush3.msra.mxu1 %v141_v10 }
  0x26   :  { %348 = vmatmul.mubr.msk.f32.vlgmr.msra.gmra.mxu0 %vm66_vm1, %v54_v7  ;;  %361 = vmatprep.subr.mxu0 %v426_v1 }
  0x27   :  { %369 = vmatprep.mubr.msk.f32.mxu0 %vm427_vm0, %v426_v1  ;;  %362 = vmatpush3.msra.mxu0 %v229_v11 }
  0x28   :  { %363 = vmatprep.subr.mxu0 %v426_v1 }
  0x29   :  { %364 = vmatpush3.msra.mxu0 %v228_v17 }
  0x2a   :  { %365 = vmatprep.subr.mxu0 %v426_v1 }
  0x2b   :  { %366 = vmatpush3.msra.mxu0 %v227_v18 }
  0x2c   :  { %367 = vmatprep.subr.mxu0 %v426_v1 }
  0x2d   :  { %368 = vmatpush3.msra.mxu0 %v226_v19 }
  0xe6   :  { %v136_v13 = vpop.f32.mrf.mxu0 }
  0xe7   :  { %v137_v14 = vadd.f32 %v318_v12, %v136_v13 }
  0xe8   :  { %v349_v15 = vpop.f32.mrf.mxu0 }
  0xe9   :  { %v140_v16 = vmax.f32 %v137_v14, 0.0 }
  0xeb   :  { %359 = vmatmul.mubr.msk.f32.vlgmr.msra.gmra.mxu1 %vm66_vm1, %v140_v16 }
 0x1ab   :  { %v221_v21 = vpop.f32.mrf.mxu1 }
 0x1ac   :  { %v222_v22 = vadd.f32 %v320_v20, %v221_v21 }
 0x1ad   :  { %v360_v23 = vpop.f32.mrf.mxu1 }
 0x1ae   :  { %v225_v24 = vmax.f32 %v222_v22, 0.0 }
 0x1b0   :  { %370 = vmatmul.mubr.msk.f32.vlgmr.msra.gmra.mxu0 %vm66_vm1, %v225_v24 }
 0x270   :  { %v306_v26 = vpop.f32.mrf.mxu0 }
 0x271   :  { %v307_v27 = vadd.f32 %v322_v25, %v306_v26 }
 0x272   :  { %v371_v28 = vpop.f32.mrf.mxu0 }
 0x273   :  { %311 = vst.msk [vmem:[%s523_s7] sm:$0xff] %vm310_vm2, %v307_v27 }
 0x274   :  { %316 = vsyncpa [#allocation4], 1 }
 0x275   :  { %317 = vsyncpa [#allocation6], 1 }

</bundles_post_ra>
